<compile_context>
chip_gen: v7x
topology: tpu7x:2x2x1
jax: 0.10.0
libtpu: 0.0.40
codegen_flags: <defaults>
</compile_context>

<pallas_src>
import functools

import jax
import jax.numpy as jnp
from jax.experimental import pallas as pl
from jax.experimental.pallas import tpu as pltpu


def _round_up(x, m):
    return ((x + m - 1) // m) * m


def lstm_chunk_kernel(pre_ref, h0_ref, c0_ref, whh_ref,
                      hs_ref, h_out_ref, c_out_ref,
                      *, tc, t_total, hidden):
    """One grid step = one chunk of `tc` timesteps.

    pre_ref : (tc, B, 4H)  hoisted input projection (+ fused bias)
    whh_ref : (H, 4H)      recurrent weight (resident in VMEM)
    hs_ref  : (tc, B, H)   per-step hidden outputs for this chunk
    h_out/c_out : (B, H)   resident carried state (constant index_map)
    """
    chunk = pl.program_id(0)
    H = hidden

    @pl.when(chunk == 0)
    def _():
        h_out_ref[...] = h0_ref[...]
        c_out_ref[...] = c0_ref[...]

    w = whh_ref[...]                       # (H, 4H), loaded once per chunk

    def step(s, carry):
        h, c = carry
        # Recurrent-only matmul: K = H (no x half, no concat copy).
        gates = pre_ref[s] + jnp.dot(h, w, preferred_element_type=jnp.float32)  # (B, 4H)
        # Gate columns are packed (i, f, o, g): one sigmoid region, one tanh region.
        ifo = jax.nn.sigmoid(gates[:, :3 * H])     # (B, 3H)
        g = jnp.tanh(gates[:, 3 * H:])             # (B, H)
        c_new = ifo[:, H:2 * H] * c + ifo[:, :H] * g
        h_new = ifo[:, 2 * H:3 * H] * jnp.tanh(c_new)
        if t_total % tc != 0:
            # Mask padded tail timesteps (last chunk only): carry state through.
            valid = (chunk * tc + s) < t_total
            h_new = jnp.where(valid, h_new, h)
            c_new = jnp.where(valid, c_new, c)
        hs_ref[s] = h_new.astype(hs_ref.dtype)
        return h_new, c_new

    h, c = jax.lax.fori_loop(0, tc, step, (h_out_ref[...], c_out_ref[...]),
                             unroll=True)
    # State refs written once per chunk (not once per step).
    h_out_ref[...] = h
    c_out_ref[...] = c


def lstm_recurrent_pallas(pre_gates, h0, c0, w_hh_t, *, tc, t_total):
    """Run the serial recurrence over a (T_pad, B, 4H) pre-gate tensor.

    Returns (hs (T_pad, B, H), h_final (B, H), c_final (B, H)).
    """
    Tp, B, G4 = pre_gates.shape
    H = h0.shape[1]
    num_chunks = Tp // tc

    kernel = functools.partial(lstm_chunk_kernel, tc=tc, t_total=t_total, hidden=H)

    out_shapes = (
        jax.ShapeDtypeStruct((Tp, B, H), jnp.float32),   # all hidden states
        jax.ShapeDtypeStruct((B, H), jnp.float32),       # final h
        jax.ShapeDtypeStruct((B, H), jnp.float32),       # final c
    )

    grid_spec = pltpu.PrefetchScalarGridSpec(
        num_scalar_prefetch=0,
        grid=(num_chunks,),
        in_specs=[
            pl.BlockSpec((tc, B, G4), lambda n: (n, 0, 0)),   # pre_gates chunk
            pl.BlockSpec((B, H), lambda n: (0, 0)),           # h0 (fetched once)
            pl.BlockSpec((B, H), lambda n: (0, 0)),           # c0 (fetched once)
            pl.BlockSpec((H, G4), lambda n: (0, 0)),          # W_hh resident
        ],
        out_specs=(
            pl.BlockSpec((tc, B, H), lambda n: (n, 0, 0)),    # hs, per-chunk slab
            pl.BlockSpec((B, H), lambda n: (0, 0)),           # h state, resident
            pl.BlockSpec((B, H), lambda n: (0, 0)),           # c state, resident
        ),
    )

    return pl.pallas_call(
        kernel,
        out_shape=out_shapes,
        grid_spec=grid_spec,
        compiler_params=pltpu.CompilerParams(
            dimension_semantics=("arbitrary",)),   # time/chunk axis is sequential
    )(pre_gates, h0, c0, w_hh_t)


@functools.partial(jax.jit, static_argnames=("tc",))
def _lstm_forward(xs, h0, c0, w_ih_t, w_hh_t, b, *, tc):
    """xs: (T, B, I).  Hoist the input projection, then run the Pallas recurrence."""
    T = xs.shape[0]
    # Embarrassingly-parallel input projection (no recurrence): one big matmul
    # that can fill the MXU / use both v7x TensorCores; bias fused here.
    pre = jnp.einsum("tbi,ig->tbg", xs, w_ih_t) + b          # (T, B, 4H) f32
    # Pad time to a chunk multiple; padded steps are masked inside the kernel.
    Tp = _round_up(T, tc)
    if Tp != T:
        pre = jnp.pad(pre, ((0, Tp - T), (0, 0), (0, 0)))
    hs, h, c = lstm_recurrent_pallas(pre, h0, c0, w_hh_t, tc=tc, t_total=T)
    return hs[:T], h, c


class StatefulLSTM:
    """JAX/Pallas port of the PyTorch StatefulLSTM: keeps (h, c) across calls."""

    def __init__(self, in_size, out_size, key, time_chunk=8):
        self.in_size = in_size
        self.out_size = out_size
        self.time_chunk = time_chunk

        k1, k2, k3, k4 = jax.random.split(key, 4)
        bound = 1.0 / (out_size ** 0.5)
        H = out_size
        # PyTorch LSTMCell params (gate rows ordered i, f, g, o).
        w_ih = jax.random.uniform(k1, (4 * H, in_size), jnp.float32, -bound, bound)
        w_hh = jax.random.uniform(k2, (4 * H, H), jnp.float32, -bound, bound)
        b_ih = jax.random.uniform(k3, (4 * H,), jnp.float32, -bound, bound)
        b_hh = jax.random.uniform(k4, (4 * H,), jnp.float32, -bound, bound)
        # Keep originals for the pure-JAX reference.
        self._w_ih, self._w_hh, self._b_ih, self._b_hh = w_ih, w_hh, b_ih, b_hh

        # Repack gate columns to (i, f, o, g): sigmoid on one contiguous 3H
        # slice, tanh on one H slice inside the kernel.
        perm = jnp.concatenate([
            jnp.arange(0, H), jnp.arange(H, 2 * H),
            jnp.arange(3 * H, 4 * H), jnp.arange(2 * H, 3 * H)])
        self.w_ih_t = w_ih.T[:, perm]                  # (I, 4H)
        self.w_hh_t = w_hh.T[:, perm]                  # (H, 4H)
        self.b = (b_ih + b_hh)[perm]                   # (4H,), fused bias

        self.h = None
        self.c = None

    def reset_state(self):
        self.h = None
        self.c = None

    def _maybe_init_state(self, batch):
        # Re-init if batch size changes (avoids silently reusing stale state).
        if self.h is None or self.h.shape[0] != batch:
            self.h = jnp.zeros((batch, self.out_size), jnp.float32)
            self.c = jnp.zeros((batch, self.out_size), jnp.float32)

    def __call__(self, x):
        """One timestep (matches the PyTorch module's forward). x: (B, in_size).

        NOTE: this path launches a pallas_call per step and re-DMAs the weights
        each call; prefer forward_sequence() for hot loops.
        """
        self._maybe_init_state(x.shape[0])
        _, self.h, self.c = _lstm_forward(
            x[None], self.h, self.c, self.w_ih_t, self.w_hh_t, self.b, tc=1)
        return self.h

    def forward_sequence(self, xs):
        """Fast path: whole sequence in one fused pallas_call. xs: (T, B, I) -> (T, B, H)."""
        self._maybe_init_state(xs.shape[1])
        hs, self.h, self.c = _lstm_forward(
            xs, self.h, self.c, self.w_ih_t, self.w_hh_t, self.b,
            tc=self.time_chunk)
        return hs


def _lstm_ref_step(x, h, c, w_ih, w_hh, b_ih, b_hh):
    """Pure-JAX reference: PyTorch LSTMCell math with original (i, f, g, o) layout."""
    H = h.shape[1]
    gates = x @ w_ih.T + h @ w_hh.T + b_ih + b_hh
    i = jax.nn.sigmoid(gates[:, 0 * H:1 * H])
    f = jax.nn.sigmoid(gates[:, 1 * H:2 * H])
    g = jnp.tanh(gates[:, 2 * H:3 * H])
    o = jax.nn.sigmoid(gates[:, 3 * H:4 * H])
    c_new = f * c + i * g
    return o * jnp.tanh(c_new), c_new


if __name__ == "__main__":
    key = jax.random.PRNGKey(0)
    k_param, k_x = jax.random.split(key)

    B, IN_SIZE, HIDDEN, T = 8, 64, 128, 12   # T=12 with chunk=8 exercises masking
    model = StatefulLSTM(IN_SIZE, HIDDEN, k_param, time_chunk=8)

    xs = jax.random.normal(k_x, (T, B, IN_SIZE), jnp.float32)

    # ---- Per-step stateful path (same call pattern as the PyTorch module) ----
    step_hs = []
    for t in range(T):
        step_hs.append(model(xs[t]))
    h_steps = jax.block_until_ready(jnp.stack(step_hs))          # (T, B, H)

    # ---- Fused-sequence fast path: whole sequence in ONE pallas_call ----
    model.reset_state()
    hs_fused = jax.block_until_ready(model.forward_sequence(xs))  # (T, B, H)

    # ---- Pure-JAX reference ----
    h_ref = jnp.zeros((B, HIDDEN), jnp.float32)
    c_ref = jnp.zeros((B, HIDDEN), jnp.float32)
    ref_hs = []
    for t in range(T):
        h_ref, c_ref = _lstm_ref_step(xs[t], h_ref, c_ref,
                                      model._w_ih, model._w_hh,
                                      model._b_ih, model._b_hh)
        ref_hs.append(h_ref)
    ref_hs = jnp.stack(ref_hs)

    assert h_steps.shape == (T, B, HIDDEN)
    assert hs_fused.shape == (T, B, HIDDEN)
    tol = 1e-4
    assert float(jnp.max(jnp.abs(h_steps - ref_hs))) < tol, "per-step path mismatch"
    assert float(jnp.max(jnp.abs(hs_fused - ref_hs))) < tol, "fused path mismatch"
    assert float(jnp.max(jnp.abs(hs_fused - h_steps))) < tol, "paths disagree"

    print("KERNEL_OK")
</pallas_src>

<mosaic_0001>
module attributes {stable_mosaic.version = 11 : i64} {
  func.func @lstm_chunk_kernel(%arg0: i32, %arg1: memref<1x8x512xf32, #tpu.memory_space<vmem>>, %arg2: memref<8x128xf32, #tpu.memory_space<vmem>>, %arg3: memref<8x128xf32, #tpu.memory_space<vmem>>, %arg4: memref<128x512xf32, #tpu.memory_space<vmem>>, %arg5: memref<1x8x128xf32, #tpu.memory_space<vmem>>, %arg6: memref<8x128xf32, #tpu.memory_space<vmem>>, %arg7: memref<8x128xf32, #tpu.memory_space<vmem>>) attributes {dimension_semantics = [#tpu.dimension_semantics<arbitrary>], iteration_bounds = array<i64: 1>, scalar_prefetch = 0 : i64, scratch_operands = 0 : i64, tpu.core_type = #tpu.core_type<tc>, window_params = [{transform_indices = @transform_0, window_bounds = array<i64: 1, 8, 512>}, {pipeline_mode = #tpu.pipeline_mode<synchronous>, transform_indices = @transform_1, window_bounds = array<i64: 8, 128>}, {pipeline_mode = #tpu.pipeline_mode<synchronous>, transform_indices = @transform_2, window_bounds = array<i64: 8, 128>}, {pipeline_mode = #tpu.pipeline_mode<synchronous>, transform_indices = @transform_3, window_bounds = array<i64: 128, 512>}, {transform_indices = @transform_4, window_bounds = array<i64: 1, 8, 128>}, {pipeline_mode = #tpu.pipeline_mode<synchronous>, transform_indices = @transform_5, window_bounds = array<i64: 8, 128>}, {pipeline_mode = #tpu.pipeline_mode<synchronous>, transform_indices = @transform_6, window_bounds = array<i64: 8, 128>}]} {
    %c0_i32 = arith.constant 0 : i32
    %0 = arith.cmpi eq, %arg0, %c0_i32 : i32
    %1 = arith.extui %0 : i1 to i32
    %c0_i32_0 = arith.constant 0 : i32
    %2 = arith.cmpi ne, %1, %c0_i32_0 : i32
    scf.if %2 {
      %c0_16 = arith.constant 0 : index
      %c0_17 = arith.constant 0 : index
      %33 = vector.load %arg2[%c0_16, %c0_17] : memref<8x128xf32, #tpu.memory_space<vmem>>, vector<8x128xf32>
      %c0_18 = arith.constant 0 : index
      %c0_19 = arith.constant 0 : index
      %34 = vector.load %arg6[%c0_18, %c0_19] : memref<8x128xf32, #tpu.memory_space<vmem>>, vector<8x128xf32>
      tpu.vector_store %arg6[%c0_18, %c0_19], %33 {strides = array<i32>} : memref<8x128xf32, #tpu.memory_space<vmem>>, vector<8x128xf32>,
      %c0_20 = arith.constant 0 : index
      %c0_21 = arith.constant 0 : index
      %35 = vector.load %arg3[%c0_20, %c0_21] : memref<8x128xf32, #tpu.memory_space<vmem>>, vector<8x128xf32>
      %c0_22 = arith.constant 0 : index
      %c0_23 = arith.constant 0 : index
      %36 = vector.load %arg7[%c0_22, %c0_23] : memref<8x128xf32, #tpu.memory_space<vmem>>, vector<8x128xf32>
      tpu.vector_store %arg7[%c0_22, %c0_23], %35 {strides = array<i32>} : memref<8x128xf32, #tpu.memory_space<vmem>>, vector<8x128xf32>,
    } else {
    }
    %c0 = arith.constant 0 : index
    %c0_1 = arith.constant 0 : index
    %3 = vector.load %arg4[%c0, %c0_1] : memref<128x512xf32, #tpu.memory_space<vmem>>, vector<128x512xf32>
    %c0_2 = arith.constant 0 : index
    %c0_3 = arith.constant 0 : index
    %4 = vector.load %arg6[%c0_2, %c0_3] : memref<8x128xf32, #tpu.memory_space<vmem>>, vector<8x128xf32>
    %c0_4 = arith.constant 0 : index
    %c0_5 = arith.constant 0 : index
    %5 = vector.load %arg7[%c0_4, %c0_5] : memref<8x128xf32, #tpu.memory_space<vmem>>, vector<8x128xf32>
    %c0_i32_6 = arith.constant 0 : i32
    %6 = arith.index_cast %c0_i32_6 : i32 to index
    %c0_7 = arith.constant 0 : index
    %c0_8 = arith.constant 0 : index
    %7 = vector.load %arg1[%6, %c0_7, %c0_8] : memref<1x8x512xf32, #tpu.memory_space<vmem>>, vector<1x8x512xf32>
    %8 = vector.shape_cast %7 : vector<1x8x512xf32> to vector<8x512xf32>
    %cst = arith.constant dense<0.000000e+00> : vector<8x512xf32>
    %9 = tpu.matmul %4, %3, %cst {dimension_numbers = #tpu.dot_dimension_numbers<[1], [0], [0], [1], [0, 0, 1, 1], [], []>} : vector<8x128xf32>, vector<128x512xf32>, vector<8x512xf32> -> vector<8x512xf32>
    %10 = arith.addf %8, %9 : vector<8x512xf32>
    %11 = vector.extract_strided_slice %10 {offsets = [0, 0], sizes = [8, 384], strides = [1, 1]} : vector<8x512xf32> to vector<8x384xf32>
    %12 = arith.negf %11 : vector<8x384xf32>
    %13 = math.exp %12 : vector<8x384xf32>
    %cst_9 = arith.constant 1.000000e+00 : f32
    %14 = vector.broadcast %cst_9 : f32 to vector<8x384xf32>
    %15 = arith.addf %14, %13 : vector<8x384xf32>
    %16 = arith.divf %14, %15 : vector<8x384xf32>
    %17 = vector.extract_strided_slice %10 {offsets = [0, 384], sizes = [8, 128], strides = [1, 1]} : vector<8x512xf32> to vector<8x128xf32>
    %18 = math.tanh %17 : vector<8x128xf32>
    %19 = vector.extract_strided_slice %16 {offsets = [0, 128], sizes = [8, 128], strides = [1, 1]} : vector<8x384xf32> to vector<8x128xf32>
    %20 = arith.mulf %19, %5 : vector<8x128xf32>
    %21 = vector.extract_strided_slice %16 {offsets = [0, 0], sizes = [8, 128], strides = [1, 1]} : vector<8x384xf32> to vector<8x128xf32>
    %22 = arith.mulf %21, %18 : vector<8x128xf32>
    %23 = arith.addf %20, %22 : vector<8x128xf32>
    %24 = vector.extract_strided_slice %16 {offsets = [0, 256], sizes = [8, 128], strides = [1, 1]} : vector<8x384xf32> to vector<8x128xf32>
    %25 = math.tanh %23 : vector<8x128xf32>
    %26 = arith.mulf %24, %25 : vector<8x128xf32>
    %27 = arith.index_cast %c0_i32_6 : i32 to index
    %c0_10 = arith.constant 0 : index
    %c0_11 = arith.constant 0 : index
    %28 = vector.load %arg5[%27, %c0_10, %c0_11] : memref<1x8x128xf32, #tpu.memory_space<vmem>>, vector<1x8x128xf32>
    %29 = vector.shape_cast %28 : vector<1x8x128xf32> to vector<8x128xf32>
    %30 = vector.shape_cast %26 : vector<8x128xf32> to vector<1x8x128xf32>
    tpu.vector_store %arg5[%27, %c0_10, %c0_11], %30 {strides = array<i32>} : memref<1x8x128xf32, #tpu.memory_space<vmem>>, vector<1x8x128xf32>,
    %c1_i32 = arith.constant 1 : i32
    %c0_12 = arith.constant 0 : index
    %c0_13 = arith.constant 0 : index
    %31 = vector.load %arg6[%c0_12, %c0_13] : memref<8x128xf32, #tpu.memory_space<vmem>>, vector<8x128xf32>
    tpu.vector_store %arg6[%c0_12, %c0_13], %26 {strides = array<i32>} : memref<8x128xf32, #tpu.memory_space<vmem>>, vector<8x128xf32>,
    %c0_14 = arith.constant 0 : index
    %c0_15 = arith.constant 0 : index
    %32 = vector.load %arg7[%c0_14, %c0_15] : memref<8x128xf32, #tpu.memory_space<vmem>>, vector<8x128xf32>
    tpu.vector_store %arg7[%c0_14, %c0_15], %23 {strides = array<i32>} : memref<8x128xf32, #tpu.memory_space<vmem>>, vector<8x128xf32>,
    return
  }
  func.func @transform_0(%arg0: i32) -> (i32, i32, i32) {
    %c0_i32 = arith.constant 0 : i32
    %c0_i32_0 = arith.constant 0 : i32
    %c0_i32_1 = arith.constant 0 : i32
    return %arg0, %c0_i32, %c0_i32_0 : i32, i32, i32
  }
  func.func @transform_1(%arg0: i32) -> (i32, i32) {
    %c0_i32 = arith.constant 0 : i32
    %c0_i32_0 = arith.constant 0 : i32
    %c0_i32_1 = arith.constant 0 : i32
    return %c0_i32, %c0_i32_0 : i32, i32
  }
  func.func @transform_2(%arg0: i32) -> (i32, i32) {
    %c0_i32 = arith.constant 0 : i32
    %c0_i32_0 = arith.constant 0 : i32
    %c0_i32_1 = arith.constant 0 : i32
    return %c0_i32, %c0_i32_0 : i32, i32
  }
  func.func @transform_3(%arg0: i32) -> (i32, i32) {
    %c0_i32 = arith.constant 0 : i32
    %c0_i32_0 = arith.constant 0 : i32
    %c0_i32_1 = arith.constant 0 : i32
    return %c0_i32, %c0_i32_0 : i32, i32
  }
  func.func @transform_4(%arg0: i32) -> (i32, i32, i32) {
    %c0_i32 = arith.constant 0 : i32
    %c0_i32_0 = arith.constant 0 : i32
    %c0_i32_1 = arith.constant 0 : i32
    return %arg0, %c0_i32, %c0_i32_0 : i32, i32, i32
  }
  func.func @transform_5(%arg0: i32) -> (i32, i32) {
    %c0_i32 = arith.constant 0 : i32
    %c0_i32_0 = arith.constant 0 : i32
    %c0_i32_1 = arith.constant 0 : i32
    return %c0_i32, %c0_i32_0 : i32, i32
  }
  func.func @transform_6(%arg0: i32) -> (i32, i32) {
    %c0_i32 = arith.constant 0 : i32
    %c0_i32_0 = arith.constant 0 : i32
    %c0_i32_1 = arith.constant 0 : i32
    return %c0_i32, %c0_i32_0 : i32, i32
  }
}

</mosaic_0001>

<bundles_post_ra>
// kernel: _lstm_forward.1
= control target key start
LH: loop header
LB: loop body
LE: loop exit
PB: predicated region body
PF: predicated region fallthrough
CT: control target
= control target key end

     0   :  { %12 = vsyncpa [#allocation3], 0  ;;  %s635_s0 = inlined_call_operand.vmem [shape: f32[1,8,512], index: 0, kind: input, shape index: {}]   ;;  %s636_s1 = inlined_call_operand.vmem [shape: f32[8,128], index: 1, kind: input, shape index: {}]   ;;  %s637_s2 = inlined_call_operand.vmem [shape: f32[8,128], index: 2, kind: input, shape index: {}]   ;;  %s638_s3 = inlined_call_operand.hbm [shape: f32[128,512], index: 3, kind: input, shape index: {}]   ;;  %s639_s4 = inlined_call_operand.hbm [shape: f32[1,8,128], index: 4, kind: output, shape index: {0}]   ;;  %s640_s5 = inlined_call_operand.hbm [shape: f32[8,128], index: 5, kind: output, shape index: {1}]   ;;  %s641_s6 = inlined_call_operand.hbm [shape: f32[8,128], index: 6, kind: output, shape index: {2}]  }
   0x1   :  { %13 = vsyncpa [#allocation4], 0 }
   0x2   :  { %14 = vsyncpa [#allocation7], 0  ;;  %s513_s21 = smov [#allocation2]   ;;  %s419_s25 = scalar_lea.hbm %s638_s3, 8192 }
   0x3   :  { %s26_s22 = sshll.u32 %s513_s21, 4  ;;  %p420_p0 = scmp.ne.s32.totalorder %s638_s3, %s419_s25  ;;  %s27_s22 = int_to_ptr.vmem [resolvable:$true] %s26_s22 }
   0x4   :  { %p423_p1 = scmp.lt.u32.totalorder %s419_s25, %s638_s3 }
   0x6   :  { %p425_p2 = pnand %p423_p1, %p420_p0 }
   0x8   :  { %428 = shalt.err (!%p425_p2)
}
   0x9   :  { %s429_s30 = scalar_lea.vmem %s27_s22, 8192  ;;  %p434_p4 = scmp.lt.s32.totalorder %s27_s22, %s27_s22 }
   0xa   :  { %p430_p3 = scmp.ne.s32.totalorder %s27_s22, %s429_s30  ;;  %p435_p5 = scmp.lt.s32.totalorder %s429_s30, %s429_s30 }
   0xc   :  { %p436_p6 = por %p435_p5, %p434_p4 }
   0xe   :  { %p437_p7 = pnand %p436_p6, %p430_p3 }
  0x10   :  { %440 = shalt.err (!%p437_p7)
}
  0x11   :  { %s514_s7 = smov 512   ;;  %s515_s8 = smov 32  }
  0x12   :  { %32 = dma.hbm_to_vmem [thread:$0]  %s638_s3, 8192, %s27_s22, [#allocation3], %s514_s7, %s514_s7, %s515_s8  }
  0x13   :  { %507 = dma.done.wait [#allocation3], 8192  }
  0x14   :  { %508 = vsyncadd [#allocation3], 4294959104  ;;  %v516_v0 = vmov 0.0   ;;  %v45_v1 = vld [vmem:[#allocation2 + $0x8] sm:$0xff]  ;;  %v44_v3 = vld [vmem:[#allocation2] sm:$0xff]  ;;  %s518_s22 = smov [#allocation5]  }
  0x15   :  { %178 = vmatprep.mubr.f32.mxu0 %v516_v0  ;;  %249 = vmatprep.mubr.f32.mxu1 %v516_v0  ;;  %v49_v2 = vld [vmem:[#allocation2 + $0x28] sm:$0xff]  ;;  %v48_v5 = vld [vmem:[#allocation2 + $0x20] sm:$0xff]  ;;  %v47_v19 = vld [vmem:[#allocation2 + $0x18] sm:$0xff]  ;;  %s293_s23 = sshll.u32 %s518_s22, 4  ;;  %s519_s24 = smov [#allocation8]   ;;  %s585_s23 = int_to_ptr.vmem [resolvable:$true] %s293_s23 }
  0x16   :  { %v332_v4 = vpack.c.bf16 %v49_v2, %v45_v1  ;;  %v53_v6 = vld [vmem:[#allocation2 + $0x48] sm:$0xff]  ;;  %v334_v8 = vpack.c.bf16 %v48_v5, %v44_v3  ;;  %v52_v10 = vld [vmem:[#allocation2 + $0x40] sm:$0xff]  ;;  %v51_v20 = vld [vmem:[#allocation2 + $0x38] sm:$0xff]  ;;  %s313_s25 = sshll.u32 %s519_s24, 4  ;;  %s587_s25 = int_to_ptr.vmem [resolvable:$true] %s313_s25 }
  0x17   :  { %v57_v7 = vld [vmem:[#allocation2 + $0x68] sm:$0xff]  ;;  %v56_v11 = vld [vmem:[#allocation2 + $0x60] sm:$0xff]  ;;  %v364_v22 = vpack.c.bf16 %v51_v20, %v47_v19  ;;  %v46_v23 = vld [vmem:[#allocation2 + $0x10] sm:$0xff] }
  0x18   :  { %v336_v9 = vpack.c.bf16 %v57_v7, %v53_v6  ;;  %v61_v12 = vld [vmem:[#allocation2 + $0x88] sm:$0xff]  ;;  %333 = vmatprep.subr.bf16.mxu0 %v332_v4  ;;  %v338_v14 = vpack.c.bf16 %v56_v11, %v52_v10  ;;  %v60_v15 = vld [vmem:[#allocation2 + $0x80] sm:$0xff]  ;;  %v50_v24 = vld [vmem:[#allocation2 + $0x30] sm:$0xff] }
  0x19   :  { %v65_v13 = vld [vmem:[#allocation2 + $0xa8] sm:$0xff]  ;;  %335 = vmatpush1.bf16.msra.mxu0 %v334_v8  ;;  %v64_v16 = vld [vmem:[#allocation2 + $0xa0] sm:$0xff]  ;;  %v366_v25 = vpack.c.bf16 %v50_v24, %v46_v23  ;;  %365 = vmatprep.subr.bf16.mxu1 %v364_v22  ;;  %v55_v27 = vld [vmem:[#allocation2 + $0x58] sm:$0xff] }
  0x1a   :  { %337 = vmatprep.subr.bf16.mxu0 %v336_v9  ;;  %v340_v17 = vpack.c.bf16 %v65_v13, %v61_v12  ;;  %v69_v18 = vld [vmem:[#allocation2 + $0xc8] sm:$0xff]  ;;  %v342_v26 = vpack.c.bf16 %v64_v16, %v60_v15  ;;  %v59_v28 = vld [vmem:[#allocation2 + $0x78] sm:$0xff]  ;;  %v54_v29 = vld [vmem:[#allocation2 + $0x50] sm:$0xff] }
  0x1b   :  { %v73_v21 = vld [vmem:[#allocation2 + $0xe8] sm:$0xff]  ;;  %v68_v31 = vld [vmem:[#allocation2 + $0xc0] sm:$0xff]  ;;  %367 = vmatpush1.bf16.msra.mxu1 %v366_v25  ;;  %v368_v33 = vpack.c.bf16 %v59_v28, %v55_v27  ;;  %v58_v34 = vld [vmem:[#allocation2 + $0x70] sm:$0xff] }
  0x1c   :  { %v344_v30 = vpack.c.bf16 %v73_v21, %v69_v18  ;;  %v72_v32 = vld [vmem:[#allocation2 + $0xe0] sm:$0xff]  ;;  %v77_v35 = vld [vmem:[#allocation2 + $0x108] sm:$0xff]  ;;  %v370_v37 = vpack.c.bf16 %v58_v34, %v54_v29  ;;  %v63_v38 = vld [vmem:[#allocation2 + $0x98] sm:$0xff] }
  0x1d   :  { %339 = vmatpush1.bf16.msra.mxu0 %v338_v14  ;;  %v81_v36 = vld [vmem:[#allocation2 + $0x128] sm:$0xff]  ;;  %369 = vmatprep.subr.bf16.mxu1 %v368_v33  ;;  %v67_v39 = vld [vmem:[#allocation2 + $0xb8] sm:$0xff]  ;;  %v62_v40 = vld [vmem:[#allocation2 + $0x90] sm:$0xff]  ;;  %v346_v42 = vpack.c.bf16 %v72_v32, %v68_v31 }
  0x1e   :  { %341 = vmatprep.subr.bf16.mxu0 %v340_v17  ;;  %v66_v41 = vld [vmem:[#allocation2 + $0xb0] sm:$0xff]  ;;  %v76_v43 = vld [vmem:[#allocation2 + $0x100] sm:$0xff]  ;;  %v372_v45 = vpack.c.bf16 %v67_v39, %v63_v38  ;;  %v348_v46 = vpack.c.bf16 %v81_v36, %v77_v35  ;;  %v85_v47 = vld [vmem:[#allocation2 + $0x148] sm:$0xff] }
  0x1f   :  { %v80_v44 = vld [vmem:[#allocation2 + $0x120] sm:$0xff]  ;;  %371 = vmatpush1.bf16.msra.mxu1 %v370_v37  ;;  %v374_v48 = vpack.c.bf16 %v66_v41, %v62_v40  ;;  %v71_v49 = vld [vmem:[#allocation2 + $0xd8] sm:$0xff]  ;;  %v89_v51 = vld [vmem:[#allocation2 + $0x168] sm:$0xff] }
  0x20   :  { %v75_v50 = vld [vmem:[#allocation2 + $0xf8] sm:$0xff]  ;;  %373 = vmatprep.subr.bf16.mxu1 %v372_v45  ;;  %v70_v53 = vld [vmem:[#allocation2 + $0xd0] sm:$0xff]  ;;  %v350_v55 = vpack.c.bf16 %v80_v44, %v76_v43  ;;  %v352_v58 = vpack.c.bf16 %v89_v51, %v85_v47  ;;  %v84_v59 = vld [vmem:[#allocation2 + $0x140] sm:$0xff] }
  0x21   :  { %343 = vmatpush1.bf16.msra.mxu0 %v342_v26  ;;  %v376_v52 = vpack.c.bf16 %v75_v50, %v71_v49  ;;  %v74_v54 = vld [vmem:[#allocation2 + $0xf0] sm:$0xff]  ;;  %v79_v56 = vld [vmem:[#allocation2 + $0x118] sm:$0xff]  ;;  %v88_v60 = vld [vmem:[#allocation2 + $0x160] sm:$0xff] }
  0x22   :  { %345 = vmatprep.subr.bf16.mxu0 %v344_v30  ;;  %v83_v57 = vld [vmem:[#allocation2 + $0x138] sm:$0xff]  ;;  %v93_v61 = vld [vmem:[#allocation2 + $0x188] sm:$0xff]  ;;  %v378_v62 = vpack.c.bf16 %v74_v54, %v70_v53  ;;  %v78_v1 = vld [vmem:[#allocation2 + $0x110] sm:$0xff]  ;;  %v354_v5 = vpack.c.bf16 %v88_v60, %v84_v59 }
  0x23   :  { %375 = vmatpush1.bf16.msra.mxu1 %v374_v48  ;;  %v97_v63 = vld [vmem:[#allocation2 + $0x1a8] sm:$0xff]  ;;  %v380_v0 = vpack.c.bf16 %v83_v57, %v79_v56  ;;  %v82_v2 = vld [vmem:[#allocation2 + $0x130] sm:$0xff]  ;;  %v87_v3 = vld [vmem:[#allocation2 + $0x158] sm:$0xff] }
  0x24   :  { %377 = vmatprep.subr.bf16.mxu1 %v376_v52  ;;  %v91_v4 = vld [vmem:[#allocation2 + $0x178] sm:$0xff]  ;;  %v356_v6 = vpack.c.bf16 %v97_v63, %v93_v61  ;;  %v92_v7 = vld [vmem:[#allocation2 + $0x180] sm:$0xff]  ;;  %v101_v9 = vld [vmem:[#allocation2 + $0x1c8] sm:$0xff]  ;;  %v382_v10 = vpack.c.bf16 %v82_v2, %v78_v1 }
  0x25   :  { %347 = vmatpush1.bf16.msra.mxu0 %v346_v42  ;;  %v96_v8 = vld [vmem:[#allocation2 + $0x1a0] sm:$0xff]  ;;  %v105_v11 = vld [vmem:[#allocation2 + $0x1e8] sm:$0xff]  ;;  %v384_v12 = vpack.c.bf16 %v91_v4, %v87_v3  ;;  %v86_v13 = vld [vmem:[#allocation2 + $0x150] sm:$0xff] }
  0x26   :  { %349 = vmatprep.subr.bf16.mxu0 %v348_v46  ;;  %v90_v14 = vld [vmem:[#allocation2 + $0x170] sm:$0xff]  ;;  %v95_v15 = vld [vmem:[#allocation2 + $0x198] sm:$0xff]  ;;  %v358_v17 = vpack.c.bf16 %v96_v8, %v92_v7  ;;  %v360_v18 = vpack.c.bf16 %v105_v11, %v101_v9  ;;  %v100_v19 = vld [vmem:[#allocation2 + $0x1c0] sm:$0xff] }
  0x27   :  { %379 = vmatpush1.bf16.msra.mxu1 %v378_v62  ;;  %v99_v16 = vld [vmem:[#allocation2 + $0x1b8] sm:$0xff]  ;;  %v104_v20 = vld [vmem:[#allocation2 + $0x1e0] sm:$0xff]  ;;  %v386_v21 = vpack.c.bf16 %v90_v14, %v86_v13  ;;  %v94_v23 = vld [vmem:[#allocation2 + $0x190] sm:$0xff] }
  0x28   :  { %381 = vmatprep.subr.bf16.mxu1 %v380_v0  ;;  %v388_v22 = vpack.c.bf16 %v99_v16, %v95_v15  ;;  %v98_v24 = vld [vmem:[#allocation2 + $0x1b0] sm:$0xff]  ;;  %v103_v25 = vld [vmem:[#allocation2 + $0x1d8] sm:$0xff]  ;;  %v362_v27 = vpack.c.bf16 %v104_v20, %v100_v19  ;;  %v40_v32 = vld [vmem:[%s636_s1] sm:$0xff] }
  0x29   :  { %351 = vmatpush1.bf16.msra.mxu0 %v350_v55  ;;  %v107_v26 = vld [vmem:[#allocation2 + $0x1f8] sm:$0xff]  ;;  %v390_v28 = vpack.c.bf16 %v98_v24, %v94_v23  ;;  %v102_v30 = vld [vmem:[#allocation2 + $0x1d0] sm:$0xff]  ;;  %v110_v34 = vld [vmem:[%s635_s0] sm:$0xff] }
  0x2a   :  { %353 = vmatprep.subr.bf16.mxu0 %v352_v58  ;;  %v392_v29 = vpack.c.bf16 %v107_v26, %v103_v25  ;;  %v106_v31 = vld [vmem:[#allocation2 + $0x1f0] sm:$0xff]  ;;  %v111_v35 = vld [vmem:[%s635_s0 + $0x8] sm:$0xff]  ;;  %v113_v46 = vld [vmem:[%s635_s0 + $0x18] sm:$0xff] }
  0x2b   :  { %383 = vmatpush1.bf16.msra.mxu1 %v382_v10  ;;  %v394_v33 = vpack.c.bf16 %v106_v31, %v102_v30  ;;  %v112_v42 = vld [vmem:[%s635_s0 + $0x10] sm:$0xff]  ;;  %v42_v55 = vld [vmem:[%s637_s2] sm:$0xff]  ;;  %s517_s0 = smov [#allocation6]  }
  0x2c   :  { %385 = vmatprep.subr.bf16.mxu1 %v384_v12  ;;  %s303_s21 = sshll.u32 %s517_s0, 4  ;;  %s304_s21 = int_to_ptr.vmem [resolvable:$true] %s303_s21 }
  0x2d   :  { %355 = vmatpush1.bf16.msra.mxu0 %v354_v5  ;;  %s441_s2 = scalar_lea.vmem %s304_s21, 128  ;;  %p446_p9 = scmp.lt.s32.totalorder %s304_s21, %s304_s21 }
  0x2e   :  { %357 = vmatprep.subr.bf16.mxu0 %v356_v6  ;;  %p442_p8 = scmp.ne.s32.totalorder %s304_s21, %s441_s2  ;;  %p447_p10 = scmp.lt.s32.totalorder %s441_s2, %s441_s2 }
  0x2f   :  { %387 = vmatpush1.bf16.msra.mxu1 %v386_v21 }
  0x30   :  { %389 = vmatprep.subr.bf16.mxu1 %v388_v22  ;;  %p448_p11 = por %p447_p10, %p446_p9 }
  0x31   :  { %359 = vmatpush1.bf16.msra.mxu0 %v358_v17 }
  0x32   :  { %361 = vmatprep.subr.bf16.mxu0 %v360_v18  ;;  %p449_p12 = pnand %p448_p11, %p442_p8 }
  0x33   :  { %391 = vmatpush1.bf16.msra.mxu1 %v390_v28 }
  0x34   :  { %393 = vmatprep.subr.bf16.mxu1 %v392_v29 }
  0x35   :  { %363 = vmatpush1.bf16.msra.mxu0 %v362_v27 }
  0x37   :  { %395 = vmatpush1.bf16.msra.mxu1 %v394_v33 }
  0x38   :  { %179 = vmatmul.mubr.f32.vlgmr.msra.gmra.mrb[0].mxu0 %v40_v32 }
  0x3a   :  { %250 = vmatmul.mubr.f32.vlgmr.msra.gmra.mrb[0].mxu1 %v40_v32 }
 0x10b   :  { %v180_v36 = vpop.f32.mrb[0].mxu0 }
 0x10c   :  { %v256_v37 = vadd.f32 %v180_v36, %v110_v34  ;;  %v182_v38 = vpop.f32.mrb[1].mxu0 }
 0x10d   :  { %v257_v39 = vadd.f32 %v182_v38, %v111_v35  ;;  %v251_v43 = vpop.f32.mrb[0].mxu1 }
 0x10e   :  { %v329_v40 = vmul.f32 -1.442695, %v256_v37  ;;  %v253_v44 = vpop.f32.mrb[1].mxu1  ;;  %v258_v45 = vadd.f32 %v251_v43, %v112_v42 }
 0x10f   :  { %v330_v41 = vmul.f32 -1.442695, %v257_v39  ;;  %v259_v48 = vadd.f32 %v253_v44, %v113_v46 }
 0x110   :  { %403 = vpow2.f32 %v329_v40  ;;  %v331_v47 = vmul.f32 -1.442695, %v258_v45 }
 0x111   :  { %405 = vpow2.f32 %v330_v41 }
 0x112   :  { %407 = vpow2.f32 %v331_v47 }
 0x113   :  { %409 = vtanh.f32 %v259_v48 }
 0x11a   :  { %v404_v49 = vpop.eup %403 }
 0x11b   :  { %v406_v50 = vpop.eup %405  ;;  %v269_v51 = vadd.f32 1.0, %v404_v49 }
 0x11c   :  { %v270_v52 = vadd.f32 1.0, %v406_v50  ;;  %v408_v53 = vpop.eup %407 }
 0x11d   :  { %411 = vrcp.f32 %v269_v51  ;;  %v410_v54 = vpop.eup %409  ;;  %v271_v57 = vadd.f32 1.0, %v408_v53 }
 0x11e   :  { %413 = vrcp.f32 %v270_v52 }
 0x11f   :  { %415 = vrcp.f32 %v271_v57 }
 0x127   :  { %v412_v56 = vpop.eup %411 }
 0x128   :  { %v414_v58 = vpop.eup %413  ;;  %v280_v59 = vmul.f32 %v412_v56, %v410_v54 }
 0x129   :  { %v279_v60 = vmul.f32 %v414_v58, %v42_v55  ;;  %v416_v62 = vpop.eup %415 }
 0x12b   :  { %v281_v61 = vadd.f32 %v280_v59, %v279_v60 }
 0x12d   :  { %417 = vtanh.f32 %v281_v61  ;;  %286 = vst [vmem:[#allocation8] sm:$0xff] %v281_v61 }
 0x137   :  { %v418_v63 = vpop.eup %417 }
 0x138   :  { %v283_v0 = vmul.f32 %v418_v63, %v416_v62 }
 0x13a   :  { %285 = vst [vmem:[#allocation6] sm:$0xff] %v283_v0  ;;  %284 = vst [vmem:[#allocation5] sm:$0xff] %v283_v0 }
 0x13b   :  { %452 = shalt.err (!%p449_p12)
}
 0x13c   :  { %s453_s28 = scalar_lea.hbm %s640_s5, 128 }
 0x13d   :  { %p454_p13 = scmp.ne.s32.totalorder %s640_s5, %s453_s28  ;;  %p457_p0 = scmp.lt.u32.totalorder %s453_s28, %s640_s5 }
 0x13f   :  { %p459_p1 = pnand %p457_p0, %p454_p13 }
 0x141   :  { %462 = shalt.err (!%p459_p1)
}
 0x142   :  { %306 = dma.vmem_to_hbm [thread:$0]  %s304_s21, 128, %s640_s5, [#allocation7]  }
 0x143   :  { %s463_s3 = scalar_lea.vmem %s585_s23, 128  ;;  %p468_p3 = scmp.lt.s32.totalorder %s585_s23, %s585_s23 }
 0x144   :  { %p464_p2 = scmp.ne.s32.totalorder %s585_s23, %s463_s3  ;;  %p469_p4 = scmp.lt.s32.totalorder %s463_s3, %s463_s3 }
 0x146   :  { %p470_p5 = por %p469_p4, %p468_p3 }
 0x148   :  { %p471_p6 = pnand %p470_p5, %p464_p2 }
 0x14a   :  { %474 = shalt.err (!%p471_p6)
}
 0x14b   :  { %s475_s13 = scalar_lea.hbm %s639_s4, 128 }
 0x14c   :  { %p476_p7 = scmp.ne.s32.totalorder %s639_s4, %s475_s13  ;;  %p479_p8 = scmp.lt.u32.totalorder %s475_s13, %s639_s4 }
 0x14e   :  { %p481_p9 = pnand %p479_p8, %p476_p7 }
 0x150   :  { %484 = shalt.err (!%p481_p9)
}
 0x151   :  { %296 = dma.vmem_to_hbm [thread:$0]  %s585_s23, 128, %s639_s4, [#allocation4]  }
 0x152   :  { %s485_s18 = scalar_lea.vmem %s587_s25, 128  ;;  %p490_p11 = scmp.lt.s32.totalorder %s587_s25, %s587_s25 }
 0x153   :  { %p486_p10 = scmp.ne.s32.totalorder %s587_s25, %s485_s18  ;;  %p491_p12 = scmp.lt.s32.totalorder %s485_s18, %s485_s18 }
 0x155   :  { %p492_p13 = por %p491_p12, %p490_p11 }
 0x157   :  { %p493_p0 = pnand %p492_p13, %p486_p10 }
 0x159   :  { %496 = shalt.err (!%p493_p0)
}
 0x15a   :  { %s497_s0 = scalar_lea.hbm %s641_s6, 128 }
 0x15b   :  { %p498_p1 = scmp.ne.s32.totalorder %s641_s6, %s497_s0  ;;  %p501_p2 = scmp.lt.u32.totalorder %s497_s0, %s641_s6 }
 0x15d   :  { %p503_p3 = pnand %p501_p2, %p498_p1 }
 0x15f   :  { %506 = shalt.err (!%p503_p3)
}
 0x160   :  { %316 = dma.vmem_to_hbm [thread:$0]  %s587_s25, 128, %s641_s6, [#allocation7]  }
 0x161   :  { %509 = dma.done.wait [#allocation4], 128  }
 0x162   :  { %510 = vsyncadd [#allocation4], 4294967168 }
 0x163   :  { %511 = dma.done.wait [#allocation7], 256  }
 0x164   :  { %512 = vsyncadd [#allocation7], 4294967040 }
 0x165   :  { %326 = vsyncpa [#allocation3], 1 }
 0x166   :  { %327 = vsyncpa [#allocation4], 1 }
 0x167   :  { %328 = vsyncpa [#allocation7], 1 }

</bundles_post_ra>
